<compile_context>
chip_gen: v5e
topology: v5e:2x2
jax: 0.10.0
libtpu: 0.0.40
codegen_flags: <defaults>
</compile_context>

<pallas_src>
import math

import jax
import jax.numpy as jnp
from jax.experimental import pallas as pl
from jax.experimental.pallas import tpu as pltpu

LANE = 128            # lane width: action_dim padded to a multiple of this
SUBLANE = 8           # f32 sublane granularity: batch tile is a multiple of this
TB_MAX = 512          # per review: 256-512 row tiles amortize ~0.35us/step overhead
VMEM_TILE_BUDGET = 48 << 20   # conservative: fits v7x's 64 MiB physical VMEM


def _cdiv(a, b):
    return -(-a // b)


def _round_up(x, m):
    return _cdiv(x, m) * m


def qnetwork_kernel(x_ref, w1_ref, b1_ref, w2_ref, b2_ref, out_ref):
    # fc1: (TB, S) @ (S, H), f32 accumulation on the MXU.  astype is a no-op
    # in the default f32 path and enables the opt-in bf16 weight path.
    x = x_ref[...]
    h = jnp.dot(x.astype(w1_ref.dtype), w1_ref[...],
                preferred_element_type=jnp.float32)
    # bias + ReLU on the VPU (always f32).
    h = jnp.maximum(h + b1_ref[...], 0.0)
    # fc2: (TB, H) @ (H, A_pad); output slab is lane-dense (multiple of 128).
    q = jnp.dot(h.astype(w2_ref.dtype), w2_ref[...],
                preferred_element_type=jnp.float32)
    out_ref[...] = (q + b2_ref[...]).astype(out_ref.dtype)


def _vmem_tile_bytes(tb, S, H, A_pad, act_itemsize, w_itemsize):
    # Double-buffered activation/output tiles + (worst case, 2x) resident
    # weights/biases.  Constant-index weight blocks may be single-buffered by
    # the compiler; budgeting 2x keeps us safe either way.
    act = 2 * tb * S + 2 * tb * A_pad
    wgt = 2 * (S * H + H * A_pad)
    bias = 2 * (H + A_pad)
    return act * act_itemsize + wgt * w_itemsize + bias * 4


def _choose_tb(B, S, H, A_pad, act_itemsize, w_itemsize):
    # Fewest grid steps with tiles <= TB_MAX (minimizes batch padding for
    # awkward B, e.g. B=130 -> tb=72, pad 144 instead of 256), but at least 2
    # steps when B >= 16 so the "parallel" axis actually splits across v7x's
    # two TensorCores.
    n_steps = _cdiv(B, TB_MAX)
    if B >= 2 * SUBLANE:
        n_steps = max(n_steps, 2)
    tb = max(SUBLANE, _round_up(_cdiv(B, n_steps), SUBLANE))
    # Shrink tile if the double-buffered footprint would bust the VMEM budget.
    while (_vmem_tile_bytes(tb, S, H, A_pad, act_itemsize, w_itemsize)
           > VMEM_TILE_BUDGET) and tb > SUBLANE:
        tb = max(SUBLANE, _round_up(tb // 2, SUBLANE))
    return tb


def qnetwork_forward(state, params, *, tb=None):
    """state: (B, state_dim) f32.  params from prepare_params(...)."""
    w1_t, b1_row, w2_t_pad, b2_row_pad, action_dim = params
    B, S = state.shape
    H = w1_t.shape[1]
    A_pad = w2_t_pad.shape[1]

    if B == 0:  # guarded edge case: empty batch
        return jnp.zeros((0, action_dim), state.dtype)

    act_itemsize = jnp.dtype(state.dtype).itemsize
    w_itemsize = jnp.dtype(w1_t.dtype).itemsize

    if tb is None:
        tb = _choose_tb(B, S, H, A_pad, act_itemsize, w_itemsize)
    else:
        tb = max(SUBLANE, _round_up(tb, SUBLANE))

    B_pad = _round_up(B, tb)
    if B_pad != B:
        state = jnp.pad(state, ((0, B_pad - B), (0, 0)))

    grid = (B_pad // tb,)

    needed = _vmem_tile_bytes(tb, S, H, A_pad, act_itemsize, w_itemsize)
    # Raise past v5e's 16 MiB scoped default when tiles grow, but stay well
    # under v7x's 64 MiB physical VMEM.
    vmem_limit = int(min(max(2 * needed, 32 << 20), 56 << 20))

    cost = pl.CostEstimate(
        flops=2 * B_pad * (S * H + H * A_pad),
        transcendentals=0,
        bytes_accessed=(act_itemsize * (B_pad * S + B_pad * A_pad + H + A_pad)
                        + w_itemsize * (S * H + H * A_pad)),
    )

    out_pad = pl.pallas_call(
        qnetwork_kernel,
        out_shape=jax.ShapeDtypeStruct((B_pad, A_pad), state.dtype),
        grid=grid,
        in_specs=[
            # Activations: one (TB, S) tile per grid step (software-pipelined).
            pl.BlockSpec((tb, S), lambda i: (i, 0)),
            # Weights / biases: constant index_map -> DMA'd once, VMEM-resident.
            pl.BlockSpec((S, H), lambda i: (0, 0)),
            pl.BlockSpec((1, H), lambda i: (0, 0)),
            pl.BlockSpec((H, A_pad), lambda i: (0, 0)),
            pl.BlockSpec((1, A_pad), lambda i: (0, 0)),
        ],
        out_specs=pl.BlockSpec((tb, A_pad), lambda i: (i, 0)),
        compiler_params=pltpu.CompilerParams(
            dimension_semantics=("parallel",),   # split over v7x's two TCs
            vmem_limit_bytes=vmem_limit,
        ),
        cost_estimate=cost,
    )(state, w1_t, b1_row, w2_t_pad, b2_row_pad)

    # Strip batch padding and the lane padding of the action dimension.
    # TODO(synk): for very large B the 128-lane padded output is write-
    # amplified ~16x at action_dim=8; a packed-output variant would cut HBM
    # writes if that regime ever matters.
    return out_pad[:B, :action_dim]


def init_linear_params(key, in_dim, out_dim):
    """Mimics PyTorch nn.Linear default init (uniform +-1/sqrt(in_dim)).
    Weight is stored pre-transposed as (in_dim, out_dim)."""
    kw, kb = jax.random.split(key)
    bound = 1.0 / math.sqrt(in_dim)
    w_t = jax.random.uniform(kw, (in_dim, out_dim), jnp.float32, -bound, bound)
    b = jax.random.uniform(kb, (out_dim,), jnp.float32, -bound, bound)
    return w_t, b


def prepare_params(w1_t, b1, w2_t, b2, *, use_bf16=False):
    """One-time parameter packing: biases as (1, out) f32 rows, fc2 zero-padded
    to a lane-dense (H, 128*k) output so kernel stores are unmasked vst.
    use_bf16=True stores weights in bf16 (single-pass MXU, halved weight DMA on
    v6e/v7x) while keeping f32 accumulation; OFF by default for exact f32
    parity with PyTorch."""
    action_dim = w2_t.shape[1]
    a_pad = _round_up(action_dim, LANE)
    w2_t_pad = jnp.pad(w2_t, ((0, 0), (0, a_pad - action_dim)))
    b2_pad = jnp.pad(b2, (0, a_pad - action_dim))
    if use_bf16:
        w1_t = w1_t.astype(jnp.bfloat16)
        w2_t_pad = w2_t_pad.astype(jnp.bfloat16)
    return (w1_t,
            b1.reshape(1, -1).astype(jnp.float32),
            w2_t_pad,
            b2_pad.reshape(1, -1).astype(jnp.float32),
            action_dim)


if __name__ == "__main__":
    batch = 8
    state_dim = 32
    hidden_dim = 128
    action_dim = 8

    key = jax.random.PRNGKey(0)
    k_x, k_fc1, k_fc2 = jax.random.split(key, 3)

    state = jax.random.normal(k_x, (batch, state_dim), jnp.float32)
    w1_t, b1 = init_linear_params(k_fc1, state_dim, hidden_dim)
    w2_t, b2 = init_linear_params(k_fc2, hidden_dim, action_dim)

    params = prepare_params(w1_t, b1, w2_t, b2)  # exact f32 path

    q = qnetwork_forward(state, params)
    q = jax.block_until_ready(q)

    # Pure-JAX reference of the same forward pass (unpadded weights).
    ref = jnp.maximum(state @ w1_t + b1, 0.0) @ w2_t + b2
    assert q.shape == (batch, action_dim)
    assert jnp.allclose(q, ref, atol=1e-5, rtol=1e-5)

    # Also exercise a bigger batch so the >=2-grid-step / tile-choice path runs.
    big_state = jax.random.normal(k_x, (130, state_dim), jnp.float32)
    q_big = jax.block_until_ready(qnetwork_forward(big_state, params))
    ref_big = jnp.maximum(big_state @ w1_t + b1, 0.0) @ w2_t + b2
    assert q_big.shape == (130, action_dim)
    assert jnp.allclose(q_big, ref_big, atol=1e-5, rtol=1e-5)

    print("KERNEL_OK")
</pallas_src>

<mosaic_0001>
module attributes {stable_mosaic.version = 11 : i64} {
  func.func @qnetwork_kernel(%arg0: i32, %arg1: memref<8x32xf32, #tpu.memory_space<vmem>>, %arg2: memref<32x128xf32, #tpu.memory_space<vmem>>, %arg3: memref<1x128xf32, #tpu.memory_space<vmem>>, %arg4: memref<128x128xf32, #tpu.memory_space<vmem>>, %arg5: memref<1x128xf32, #tpu.memory_space<vmem>>, %arg6: memref<8x128xf32, #tpu.memory_space<vmem>>) attributes {dimension_semantics = [#tpu.dimension_semantics<parallel>], iteration_bounds = array<i64: 1>, scalar_prefetch = 0 : i64, scratch_operands = 0 : i64, tpu.core_type = #tpu.core_type<tc>, window_params = [{transform_indices = @transform_0, window_bounds = array<i64: 8, 32>}, {pipeline_mode = #tpu.pipeline_mode<synchronous>, transform_indices = @transform_1, window_bounds = array<i64: 32, 128>}, {pipeline_mode = #tpu.pipeline_mode<synchronous>, transform_indices = @transform_2, window_bounds = array<i64: 1, 128>}, {pipeline_mode = #tpu.pipeline_mode<synchronous>, transform_indices = @transform_3, window_bounds = array<i64: 128, 128>}, {pipeline_mode = #tpu.pipeline_mode<synchronous>, transform_indices = @transform_4, window_bounds = array<i64: 1, 128>}, {transform_indices = @transform_5, window_bounds = array<i64: 8, 128>}]} {
    %c0 = arith.constant 0 : index
    %c0_0 = arith.constant 0 : index
    %0 = vector.load %arg1[%c0, %c0_0] : memref<8x32xf32, #tpu.memory_space<vmem>>, vector<8x32xf32>
    %c0_1 = arith.constant 0 : index
    %c0_2 = arith.constant 0 : index
    %1 = vector.load %arg2[%c0_1, %c0_2] : memref<32x128xf32, #tpu.memory_space<vmem>>, vector<32x128xf32>
    %cst = arith.constant dense<0.000000e+00> : vector<8x128xf32>
    %2 = tpu.matmul %0, %1, %cst {dimension_numbers = #tpu.dot_dimension_numbers<[1], [0], [0], [1], [0, 0, 1, 1], [], []>} : vector<8x32xf32>, vector<32x128xf32>, vector<8x128xf32> -> vector<8x128xf32>
    %c0_3 = arith.constant 0 : index
    %c0_4 = arith.constant 0 : index
    %3 = vector.load %arg3[%c0_3, %c0_4] : memref<1x128xf32, #tpu.memory_space<vmem>>, vector<1x128xf32>
    %4 = vector.broadcast %3 : vector<1x128xf32> to vector<8x128xf32>
    %5 = arith.addf %2, %4 : vector<8x128xf32>
    %cst_5 = arith.constant 0.000000e+00 : f32
    %6 = vector.broadcast %cst_5 : f32 to vector<8x128xf32>
    %7 = arith.maximumf %5, %6 : vector<8x128xf32>
    %c0_6 = arith.constant 0 : index
    %c0_7 = arith.constant 0 : index
    %8 = vector.load %arg4[%c0_6, %c0_7] : memref<128x128xf32, #tpu.memory_space<vmem>>, vector<128x128xf32>
    %cst_8 = arith.constant dense<0.000000e+00> : vector<8x128xf32>
    %9 = tpu.matmul %7, %8, %cst_8 {dimension_numbers = #tpu.dot_dimension_numbers<[1], [0], [0], [1], [0, 0, 1, 1], [], []>} : vector<8x128xf32>, vector<128x128xf32>, vector<8x128xf32> -> vector<8x128xf32>
    %c0_9 = arith.constant 0 : index
    %c0_10 = arith.constant 0 : index
    %10 = vector.load %arg5[%c0_9, %c0_10] : memref<1x128xf32, #tpu.memory_space<vmem>>, vector<1x128xf32>
    %11 = vector.broadcast %10 : vector<1x128xf32> to vector<8x128xf32>
    %12 = arith.addf %9, %11 : vector<8x128xf32>
    %c0_11 = arith.constant 0 : index
    %c0_12 = arith.constant 0 : index
    %13 = vector.load %arg6[%c0_11, %c0_12] : memref<8x128xf32, #tpu.memory_space<vmem>>, vector<8x128xf32>
    tpu.vector_store %arg6[%c0_11, %c0_12], %12 {strides = array<i32>} : memref<8x128xf32, #tpu.memory_space<vmem>>, vector<8x128xf32>,
    return
  }
  func.func @transform_0(%arg0: i32) -> (i32, i32) {
    %c0_i32 = arith.constant 0 : i32
    %c0_i32_0 = arith.constant 0 : i32
    return %arg0, %c0_i32 : i32, i32
  }
  func.func @transform_1(%arg0: i32) -> (i32, i32) {
    %c0_i32 = arith.constant 0 : i32
    %c0_i32_0 = arith.constant 0 : i32
    %c0_i32_1 = arith.constant 0 : i32
    return %c0_i32, %c0_i32_0 : i32, i32
  }
  func.func @transform_2(%arg0: i32) -> (i32, i32) {
    %c0_i32 = arith.constant 0 : i32
    %c0_i32_0 = arith.constant 0 : i32
    %c0_i32_1 = arith.constant 0 : i32
    return %c0_i32, %c0_i32_0 : i32, i32
  }
  func.func @transform_3(%arg0: i32) -> (i32, i32) {
    %c0_i32 = arith.constant 0 : i32
    %c0_i32_0 = arith.constant 0 : i32
    %c0_i32_1 = arith.constant 0 : i32
    return %c0_i32, %c0_i32_0 : i32, i32
  }
  func.func @transform_4(%arg0: i32) -> (i32, i32) {
    %c0_i32 = arith.constant 0 : i32
    %c0_i32_0 = arith.constant 0 : i32
    %c0_i32_1 = arith.constant 0 : i32
    return %c0_i32, %c0_i32_0 : i32, i32
  }
  func.func @transform_5(%arg0: i32) -> (i32, i32) {
    %c0_i32 = arith.constant 0 : i32
    %c0_i32_0 = arith.constant 0 : i32
    return %arg0, %c0_i32 : i32, i32
  }
}

</mosaic_0001>

<bundles_post_ra>
// kernel: tpu_custom_call.1
= control target key start
LH: loop header
LB: loop body
LE: loop exit
PB: predicated region body
PF: predicated region fallthrough
CT: control target
= control target key end

     0   :  { %10 = vsyncpa [#allocation3], 0  ;;  %s324_s0 = inlined_call_operand.hbm [shape: f32[8,32], index: 0, kind: input, shape index: {}]   ;;  %s325_s1 = inlined_call_operand.hbm [shape: f32[32,128], index: 1, kind: input, shape index: {}]   ;;  %s326_s2 = inlined_call_operand.vmem [shape: f32[1,128], index: 2, kind: input, shape index: {}]   ;;  %s327_s3 = inlined_call_operand.hbm [shape: f32[128,128], index: 3, kind: input, shape index: {}]   ;;  %s328_s4 = inlined_call_operand.vmem [shape: f32[1,128], index: 4, kind: input, shape index: {}]   ;;  %s329_s5 = inlined_call_operand.hbm [shape: f32[8,128], index: 5, kind: output, shape index: {}]  }
   0x1   :  { %11 = vsyncpa [#allocation6], 0  ;;  %s28_s20 = sshll.u32 %s325_s1, 4  ;;  %s29_s20 = int_to_ptr.hbm [resolvable:$true] %s28_s20 }
   0x2   :  { %12 = vsyncpa [#allocation4], 0  ;;  %s270_s21 = smov [#allocation5]   ;;  %s18_s25 = sshll.u32 %s324_s0, 4  ;;  %s19_s25 = int_to_ptr.hbm [resolvable:$true] %s18_s25 }
   0x3   :  { %s30_s22 = sshll.u32 %s270_s21, 4  ;;  %s271_s26 = smov 128   ;;  %s31_s22 = int_to_ptr.vmem [resolvable:$true] %s30_s22 }
   0x4   :  { %s272_s27 = smov 8   ;;  %s273_s28 = smov [#allocation2]  }
   0x5   :  { %36 = dma.hbm_to_vmem [thread:$0]  %s29_s20, 512, %s31_s22, [#allocation6], %s271_s26, %s271_s26, %s272_s27  }
   0x6   :  { %s20_s29 = sshll.u32 %s273_s28, 4  ;;  %s43_s7 = sshll.u32 %s327_s3, 4  ;;  %s21_s29 = int_to_ptr.vmem [resolvable:$true] %s20_s29  ;;  %s44_s7 = int_to_ptr.hbm [resolvable:$true] %s43_s7 }
   0x7   :  { %23 = dma.hbm_to_vmem [thread:$0]  %s19_s25, 128, %s21_s29, [#allocation3]  }
   0x8   :  { %s274_s1 = smov [#allocation7]  }
   0x9   :  { %s45_s8 = sshll.u32 %s274_s1, 4  ;;  %s46_s8 = int_to_ptr.vmem [resolvable:$true] %s45_s8 }
   0xa   :  { %51 = dma.hbm_to_vmem [thread:$0]  %s44_s7, 2048, %s46_s8, [#allocation6], %s271_s26, %s271_s26, %s272_s27  }
   0xb   :  { %264 = dma.done.wait [#allocation3], 128  }
   0xc   :  { %265 = vsyncadd [#allocation3], 4294967168 }
   0xd   :  { %266 = dma.done.wait [#allocation6], 2560  }
   0xe   :  { %267 = vsyncadd [#allocation6], 4294964736  ;;  %v70_v0 = vld [vmem:[#allocation5 + $0x18] sm:$0xff]  ;;  %v69_v1 = vld [vmem:[#allocation5 + $0x10] sm:$0xff]  ;;  %vm75_vm0 = vcmask 261120   ;;  %s275_s11 = smov [#allocation8]  }
   0xf   :  { %91 = vmatpush.msra.mxu0 %v70_v0  ;;  %v115_v2 = vld [vmem:[#allocation7 + $0x78] sm:$0xff]  ;;  %v68_v3 = vld [vmem:[#allocation5 + $0x8] sm:$0xff]  ;;  %v114_v4 = vld [vmem:[#allocation7 + $0x70] sm:$0xff]  ;;  %s146_s12 = sshll.u32 %s275_s11, 4  ;;  %s148_s15 = sshll.u32 %s329_s5, 4  ;;  %s147_s12 = int_to_ptr.vmem [resolvable:$true] %s146_s12  ;;  %s149_s15 = int_to_ptr.hbm [resolvable:$true] %s148_s15 }
  0x10   :  { %120 = vmatpush.msra.mxu1 %v115_v2  ;;  %v113_v5 = vld [vmem:[#allocation7 + $0x68] sm:$0xff]  ;;  %v67_v6 = vld [vmem:[#allocation5] sm:$0xff]  ;;  %v66_v7 = vld [vmem:[#allocation2] sm:$0xff] }
  0x11   :  { %92 = vmatpush.msra.mxu0 %v69_v1  ;;  %v112_v8 = vld [vmem:[#allocation7 + $0x60] sm:$0xff]  ;;  %v111_v9 = vld [vmem:[#allocation7 + $0x58] sm:$0xff]  ;;  %v110_v10 = vld [vmem:[#allocation7 + $0x50] sm:$0xff] }
  0x12   :  { %121 = vmatpush.msra.mxu1 %v114_v4  ;;  %v109_v11 = vld [vmem:[#allocation7 + $0x48] sm:$0xff]  ;;  %v108_v12 = vld [vmem:[#allocation7 + $0x40] sm:$0xff]  ;;  %v107_v13 = vld [vmem:[#allocation7 + $0x38] sm:$0xff] }
  0x13   :  { %93 = vmatpush.msra.mxu0 %v68_v3  ;;  %v106_v14 = vld [vmem:[#allocation7 + $0x30] sm:$0xff]  ;;  %v105_v15 = vld [vmem:[#allocation7 + $0x28] sm:$0xff]  ;;  %v104_v16 = vld [vmem:[#allocation7 + $0x20] sm:$0xff] }
  0x14   :  { %122 = vmatpush.msra.mxu1 %v113_v5  ;;  %v103_v17 = vld [vmem:[#allocation7 + $0x18] sm:$0xff]  ;;  %v102_v18 = vld [vmem:[#allocation7 + $0x10] sm:$0xff]  ;;  %v101_v19 = vld [vmem:[#allocation7 + $0x8] sm:$0xff] }
  0x15   :  { %94 = vmatpush.msra.mxu0 %v67_v6  ;;  %v100_v20 = vld [vmem:[#allocation7] sm:$0xff]  ;;  %v166_v21 = vld [vmem:[%s326_s2] ss:$0 sm:$0xff] }
  0x16   :  { %159 = vmatmul.msk.f32.vlgmr.msra.gmra.mxu0 %vm75_vm0, %v66_v7  ;;  %123 = vmatpush.msra.mxu1 %v112_v8  ;;  %v167_v25 = vld [vmem:[%s328_s4] ss:$0 sm:$0xff] }
  0x18   :  { %124 = vmatpush.msra.mxu1 %v111_v9 }
  0x1a   :  { %125 = vmatpush.msra.mxu1 %v110_v10 }
  0x1c   :  { %126 = vmatpush.msra.mxu1 %v109_v11 }
  0x1e   :  { %127 = vmatpush.msra.mxu1 %v108_v12 }
  0x20   :  { %128 = vmatpush.msra.mxu1 %v107_v13 }
  0x22   :  { %129 = vmatpush.msra.mxu1 %v106_v14 }
  0x24   :  { %130 = vmatpush.msra.mxu1 %v105_v15 }
  0x26   :  { %131 = vmatpush.msra.mxu1 %v104_v16 }
  0x28   :  { %132 = vmatpush.msra.mxu1 %v103_v17 }
  0x2a   :  { %133 = vmatpush.msra.mxu1 %v102_v18 }
  0x2c   :  { %134 = vmatpush.msra.mxu1 %v101_v19 }
  0x2e   :  { %135 = vmatpush.msra.mxu1 %v100_v20 }
  0x93   :  { %v96_v22 = vpop.f32.mrf.mxu0 }
  0x94   :  { %v97_v23 = vadd.f32 %v166_v21, %v96_v22 }
  0x96   :  { %v99_v24 = vmax.f32 %v97_v23, 0.0 }
  0x98   :  { %136 = vmatmul.f32.vlgmr.msra.gmra.mxu1 %v99_v24 }
 0x115   :  { %v137_v26 = vpop.f32.mrf.mxu1 }
 0x116   :  { %v138_v27 = vadd.f32 %v167_v25, %v137_v26 }
 0x118   :  { %140 = vst [vmem:[#allocation8] sm:$0xff] %v138_v27 }
 0x119   :  { %151 = dma.vmem_to_hbm [thread:$0]  %s147_s12, 128, %s149_s15, [#allocation4]  }
 0x11a   :  { %268 = dma.done.wait [#allocation4], 128  }
 0x11b   :  { %269 = vsyncadd [#allocation4], 4294967168 }
 0x11c   :  { %156 = vsyncpa [#allocation3], 1 }
 0x11d   :  { %157 = vsyncpa [#allocation6], 1 }
 0x11e   :  { %158 = vsyncpa [#allocation4], 1 }

</bundles_post_ra>
